<compile_context>
chip_gen: v5e
topology: v5e:2x2
jax: 0.10.0
libtpu: 0.0.40
codegen_flags: <defaults>
</compile_context>

<pallas_src>
import functools

import jax
import jax.numpy as jnp
from jax.experimental import pallas as pl
from jax.experimental.pallas import tpu as pltpu

SUBLANES = 8
LANES = 128
MAX_BLOCK_ROWS = 4096  # (4096, 128) f32 block = 2 MiB; 2 inputs x 2 bufs = 8 MiB


def _dice_kernel(x_ref, t_ref, o_ref, *, block_rows, steps_per_slot,
                 n_valid, needs_mask):
    # o_ref: (3, 8, 128) f32 accumulator, revisited across the "arbitrary" axis.
    @pl.when(pl.program_id(1) == 0)
    def _():
        o_ref[...] = jnp.zeros_like(o_ref)

    x = x_ref[...].astype(jnp.float32)
    t = t_ref[...].astype(jnp.float32)

    # sigmoid via a single tanh -> one EUP push per element (vs exp + divide).
    s = 0.5 * (jnp.tanh(0.5 * x) + 1.0)

    if needs_mask:
        # Mask (a) zero-pad elements appended by the wrapper and (b) garbage
        # rows of a ragged final block, at element granularity.
        blk = pl.program_id(0) * steps_per_slot + pl.program_id(1)
        row = jax.lax.broadcasted_iota(jnp.int32, x.shape, 0) + blk * block_rows
        lane = jax.lax.broadcasted_iota(jnp.int32, x.shape, 1)
        full_rows = n_valid // LANES
        rem = n_valid % LANES
        valid = (row < full_rows) | ((row == full_rows) & (lane < rem))
        s = jnp.where(valid, s, 0.0)
        t = jnp.where(valid, t, 0.0)

    def part(v):
        # (block_rows, 128) -> (block_rows//8, 8, 128): pure VPU vreg adds
        # down to an (8, 128) partial; no per-step XLU / scalar reductions.
        return jnp.sum(v.reshape(-1, SUBLANES, LANES), axis=0)

    o_ref[0] += part(s * t)   # intersection partial
    o_ref[1] += part(s)       # sum(sigmoid(x)) partial
    o_ref[2] += part(t)       # sum(targets) partial


def dice_loss(inputs, targets, smooth=1.0):
    """Pallas implementation of DiceLoss.forward (returns a scalar f32)."""
    x = inputs.reshape(-1)
    t = targets.reshape(-1)
    n = x.shape[0]

    pad_unit = SUBLANES * LANES
    n_pad = pl.cdiv(n, pad_unit) * pad_unit
    if n_pad != n:
        # TODO(synk): the tail pad copies the arrays once; a fully padless path
        # would need a manual ragged 1-D tail DMA.
        x = jnp.pad(x, (0, n_pad - n))
        t = jnp.pad(t, (0, n_pad - n))

    rows = n_pad // LANES                      # multiple of 8
    block_rows = min(MAX_BLOCK_ROWS, rows)     # multiple of 8
    total_blocks = pl.cdiv(rows, block_rows)
    # 2-way parallel leading axis (both v7x TensorCores) when it splits evenly.
    num_slots = 2 if (total_blocks >= 2 and total_blocks % 2 == 0) else 1
    steps_per_slot = total_blocks // num_slots
    needs_mask = (n_pad != n) or (rows % block_rows != 0)

    x2 = x.reshape(rows, LANES)
    t2 = t.reshape(rows, LANES)

    kernel = functools.partial(
        _dice_kernel,
        block_rows=block_rows,
        steps_per_slot=steps_per_slot,
        n_valid=n,
        needs_mask=needs_mask,
    )

    in_map = lambda s, k: (s * steps_per_slot + k, 0)

    out = pl.pallas_call(
        kernel,
        out_shape=jax.ShapeDtypeStruct((num_slots, 3, SUBLANES, LANES),
                                       jnp.float32),
        grid_spec=pltpu.PrefetchScalarGridSpec(
            num_scalar_prefetch=0,
            grid=(num_slots, steps_per_slot),
            in_specs=[
                pl.BlockSpec((block_rows, LANES), in_map),
                pl.BlockSpec((block_rows, LANES), in_map),
            ],
            out_specs=pl.BlockSpec((None, 3, SUBLANES, LANES),
                                   lambda s, k: (s, 0, 0, 0)),
        ),
        compiler_params=pltpu.CompilerParams(
            dimension_semantics=("parallel", "arbitrary"),
            vmem_limit_bytes=32 * 1024 * 1024,
        ),
    )(x2, t2)

    # Tiny epilogue on 3 KiB of partials: cross-lane reduction + dice formula.
    sums = out.sum(axis=(0, 2, 3))
    intersection, s_sum, t_sum = sums[0], sums[1], sums[2]
    dice = (2.0 * intersection + smooth) / (s_sum + t_sum + smooth)
    return 1.0 - dice


def _dice_loss_ref(inputs, targets, smooth=1.0):
    s = jax.nn.sigmoid(inputs.reshape(-1).astype(jnp.float32))
    t = targets.reshape(-1).astype(jnp.float32)
    inter = jnp.sum(s * t)
    dice = (2.0 * inter + smooth) / (jnp.sum(s) + jnp.sum(t) + smooth)
    return 1.0 - dice


if __name__ == "__main__":
    key = jax.random.PRNGKey(0)
    k1, k2, k3, k4 = jax.random.split(key, 4)

    # NCHW logits and binary targets, like a segmentation head output (aligned).
    x = jax.random.normal(k1, (2, 4, 16, 16), dtype=jnp.float32)
    tgt = (jax.random.uniform(k2, (2, 4, 16, 16)) > 0.5).astype(jnp.float32)
    loss = jax.block_until_ready(dice_loss(x, tgt, smooth=1.0))
    ref = jax.block_until_ready(_dice_loss_ref(x, tgt, smooth=1.0))
    assert jnp.isfinite(loss), "non-finite loss"
    assert jnp.allclose(loss, ref, rtol=1e-5, atol=1e-5), (loss, ref)

    # Unaligned element count -> exercises the in-kernel element mask path.
    x_u = jax.random.normal(k3, (3, 5, 7, 9), dtype=jnp.float32)
    tgt_u = (jax.random.uniform(k4, (3, 5, 7, 9)) > 0.5).astype(jnp.float32)
    loss_u = jax.block_until_ready(dice_loss(x_u, tgt_u, smooth=1.0))
    ref_u = jax.block_until_ready(_dice_loss_ref(x_u, tgt_u, smooth=1.0))
    assert jnp.isfinite(loss_u), "non-finite loss (unaligned)"
    assert jnp.allclose(loss_u, ref_u, rtol=1e-5, atol=1e-5), (loss_u, ref_u)

    print("KERNEL_OK")
</pallas_src>

<mosaic_0001>
module attributes {stable_mosaic.version = 11 : i64} {
  func.func @_dice_kernel(%arg0: i32, %arg1: i32, %arg2: memref<16x128xf32, #tpu.memory_space<vmem>>, %arg3: memref<16x128xf32, #tpu.memory_space<vmem>>, %arg4: memref<1x3x8x128xf32, #tpu.memory_space<vmem>>) attributes {dimension_semantics = [#tpu.dimension_semantics<parallel>, #tpu.dimension_semantics<arbitrary>], iteration_bounds = array<i64: 1, 1>, scalar_prefetch = 0 : i64, scratch_operands = 0 : i64, tpu.core_type = #tpu.core_type<tc>, window_params = [{transform_indices = @transform_0, window_bounds = array<i64: 16, 128>}, {transform_indices = @transform_1, window_bounds = array<i64: 16, 128>}, {transform_indices = @transform_2, window_bounds = array<i64: 1, 3, 8, 128>}]} {
    %c0_i32 = arith.constant 0 : i32
    %0 = arith.cmpi eq, %arg1, %c0_i32 : i32
    %1 = arith.extui %0 : i1 to i32
    %c0_i32_0 = arith.constant 0 : i32
    %2 = arith.cmpi ne, %1, %c0_i32_0 : i32
    scf.if %2 {
      %cst_31 = arith.constant 0.000000e+00 : f32
      %37 = vector.broadcast %cst_31 : f32 to vector<3x8x128xf32>
      %c0_32 = arith.constant 0 : index
      %c0_33 = arith.constant 0 : index
      %c0_34 = arith.constant 0 : index
      %c0_35 = arith.constant 0 : index
      %38 = vector.load %arg4[%c0_32, %c0_33, %c0_34, %c0_35] : memref<1x3x8x128xf32, #tpu.memory_space<vmem>>, vector<1x3x8x128xf32>
      %39 = vector.shape_cast %38 : vector<1x3x8x128xf32> to vector<3x8x128xf32>
      %40 = vector.shape_cast %37 : vector<3x8x128xf32> to vector<1x3x8x128xf32>
      tpu.vector_store %arg4[%c0_32, %c0_33, %c0_34, %c0_35], %40 {strides = array<i32>} : memref<1x3x8x128xf32, #tpu.memory_space<vmem>>, vector<1x3x8x128xf32>,
    } else {
    }
    %c0 = arith.constant 0 : index
    %c0_1 = arith.constant 0 : index
    %3 = vector.load %arg2[%c0, %c0_1] : memref<16x128xf32, #tpu.memory_space<vmem>>, vector<16x128xf32>
    %c0_2 = arith.constant 0 : index
    %c0_3 = arith.constant 0 : index
    %4 = vector.load %arg3[%c0_2, %c0_3] : memref<16x128xf32, #tpu.memory_space<vmem>>, vector<16x128xf32>
    %cst = arith.constant 5.000000e-01 : f32
    %5 = vector.broadcast %cst : f32 to vector<16x128xf32>
    %6 = arith.mulf %5, %3 : vector<16x128xf32>
    %7 = math.tanh %6 : vector<16x128xf32>
    %cst_4 = arith.constant 1.000000e+00 : f32
    %8 = vector.broadcast %cst_4 : f32 to vector<16x128xf32>
    %9 = arith.addf %7, %8 : vector<16x128xf32>
    %cst_5 = arith.constant 5.000000e-01 : f32
    %10 = vector.broadcast %cst_5 : f32 to vector<16x128xf32>
    %11 = arith.mulf %10, %9 : vector<16x128xf32>
    %c0_6 = arith.constant 0 : index
    %c0_7 = arith.constant 0 : index
    %c0_8 = arith.constant 0 : index
    %c0_9 = arith.constant 0 : index
    %12 = vector.load %arg4[%c0_6, %c0_7, %c0_8, %c0_9] : memref<1x3x8x128xf32, #tpu.memory_space<vmem>>, vector<1x1x8x128xf32>
    %13 = vector.shape_cast %12 : vector<1x1x8x128xf32> to vector<8x128xf32>
    %14 = arith.mulf %11, %4 : vector<16x128xf32>
    %15 = vector.shape_cast %14 : vector<16x128xf32> to vector<2x8x128xf32>
    %cst_10 = arith.constant dense<0.000000e+00> : vector<8x128xf32>
    %16 = vector.multi_reduction <add>, %15, %cst_10 [0] : vector<2x8x128xf32> to vector<8x128xf32>
    %17 = arith.addf %13, %16 : vector<8x128xf32>
    %c0_11 = arith.constant 0 : index
    %c0_12 = arith.constant 0 : index
    %c0_13 = arith.constant 0 : index
    %c0_14 = arith.constant 0 : index
    %18 = vector.load %arg4[%c0_11, %c0_12, %c0_13, %c0_14] : memref<1x3x8x128xf32, #tpu.memory_space<vmem>>, vector<1x1x8x128xf32>
    %19 = vector.shape_cast %18 : vector<1x1x8x128xf32> to vector<8x128xf32>
    %20 = vector.shape_cast %17 : vector<8x128xf32> to vector<1x1x8x128xf32>
    tpu.vector_store %arg4[%c0_11, %c0_12, %c0_13, %c0_14], %20 {strides = array<i32>} : memref<1x3x8x128xf32, #tpu.memory_space<vmem>>, vector<1x1x8x128xf32>,
    %c0_15 = arith.constant 0 : index
    %c1 = arith.constant 1 : index
    %c0_16 = arith.constant 0 : index
    %c0_17 = arith.constant 0 : index
    %21 = vector.load %arg4[%c0_15, %c1, %c0_16, %c0_17] : memref<1x3x8x128xf32, #tpu.memory_space<vmem>>, vector<1x1x8x128xf32>
    %22 = vector.shape_cast %21 : vector<1x1x8x128xf32> to vector<8x128xf32>
    %23 = vector.shape_cast %11 : vector<16x128xf32> to vector<2x8x128xf32>
    %cst_18 = arith.constant dense<0.000000e+00> : vector<8x128xf32>
    %24 = vector.multi_reduction <add>, %23, %cst_18 [0] : vector<2x8x128xf32> to vector<8x128xf32>
    %25 = arith.addf %22, %24 : vector<8x128xf32>
    %c0_19 = arith.constant 0 : index
    %c1_20 = arith.constant 1 : index
    %c0_21 = arith.constant 0 : index
    %c0_22 = arith.constant 0 : index
    %26 = vector.load %arg4[%c0_19, %c1_20, %c0_21, %c0_22] : memref<1x3x8x128xf32, #tpu.memory_space<vmem>>, vector<1x1x8x128xf32>
    %27 = vector.shape_cast %26 : vector<1x1x8x128xf32> to vector<8x128xf32>
    %28 = vector.shape_cast %25 : vector<8x128xf32> to vector<1x1x8x128xf32>
    tpu.vector_store %arg4[%c0_19, %c1_20, %c0_21, %c0_22], %28 {strides = array<i32>} : memref<1x3x8x128xf32, #tpu.memory_space<vmem>>, vector<1x1x8x128xf32>,
    %c0_23 = arith.constant 0 : index
    %c2 = arith.constant 2 : index
    %c0_24 = arith.constant 0 : index
    %c0_25 = arith.constant 0 : index
    %29 = vector.load %arg4[%c0_23, %c2, %c0_24, %c0_25] : memref<1x3x8x128xf32, #tpu.memory_space<vmem>>, vector<1x1x8x128xf32>
    %30 = vector.shape_cast %29 : vector<1x1x8x128xf32> to vector<8x128xf32>
    %31 = vector.shape_cast %4 : vector<16x128xf32> to vector<2x8x128xf32>
    %cst_26 = arith.constant dense<0.000000e+00> : vector<8x128xf32>
    %32 = vector.multi_reduction <add>, %31, %cst_26 [0] : vector<2x8x128xf32> to vector<8x128xf32>
    %33 = arith.addf %30, %32 : vector<8x128xf32>
    %c0_27 = arith.constant 0 : index
    %c2_28 = arith.constant 2 : index
    %c0_29 = arith.constant 0 : index
    %c0_30 = arith.constant 0 : index
    %34 = vector.load %arg4[%c0_27, %c2_28, %c0_29, %c0_30] : memref<1x3x8x128xf32, #tpu.memory_space<vmem>>, vector<1x1x8x128xf32>
    %35 = vector.shape_cast %34 : vector<1x1x8x128xf32> to vector<8x128xf32>
    %36 = vector.shape_cast %33 : vector<8x128xf32> to vector<1x1x8x128xf32>
    tpu.vector_store %arg4[%c0_27, %c2_28, %c0_29, %c0_30], %36 {strides = array<i32>} : memref<1x3x8x128xf32, #tpu.memory_space<vmem>>, vector<1x1x8x128xf32>,
    return
  }
  func.func @transform_0(%arg0: i32, %arg1: i32) -> (i32, i32) {
    %c1_i32 = arith.constant 1 : i32
    %0 = arith.muli %arg0, %c1_i32 : i32
    %1 = arith.addi %0, %arg1 : i32
    %c0_i32 = arith.constant 0 : i32
    %c0_i32_0 = arith.constant 0 : i32
    return %1, %c0_i32 : i32, i32
  }
  func.func @transform_1(%arg0: i32, %arg1: i32) -> (i32, i32) {
    %c1_i32 = arith.constant 1 : i32
    %0 = arith.muli %arg0, %c1_i32 : i32
    %1 = arith.addi %0, %arg1 : i32
    %c0_i32 = arith.constant 0 : i32
    %c0_i32_0 = arith.constant 0 : i32
    return %1, %c0_i32 : i32, i32
  }
  func.func @transform_2(%arg0: i32, %arg1: i32) -> (i32, i32, i32, i32) {
    %c0_i32 = arith.constant 0 : i32
    %c0_i32_0 = arith.constant 0 : i32
    %c0_i32_1 = arith.constant 0 : i32
    %c0_i32_2 = arith.constant 0 : i32
    return %arg0, %c0_i32, %c0_i32_0, %c0_i32_1 : i32, i32, i32, i32
  }
}

</mosaic_0001>

<bundles_post_ra>
// kernel: tpu_custom_call.1
= control target key start
LH: loop header
LB: loop body
LE: loop exit
PB: predicated region body
PF: predicated region fallthrough
CT: control target
= control target key end

     0   :  { %7 = vsyncpa [#allocation3], 0  ;;  %s237_s0 = inlined_call_operand.hbm [shape: f32[16,128], index: 0, kind: input, shape index: {}]   ;;  %s238_s1 = inlined_call_operand.hbm [shape: f32[16,128], index: 1, kind: input, shape index: {}]   ;;  %s239_s2 = inlined_call_operand.hbm [shape: f32[1,3,8,128], index: 2, kind: output, shape index: {}]  }
   0x1   :  { %8 = vsyncpa [#allocation6], 0 }
   0x2   :  { %9 = vsyncpa [#allocation4], 0  ;;  %s18_s11 = sshll.u32 %s237_s0, 4  ;;  %s199_s12 = smov [#allocation2]   ;;  %s19_s11 = int_to_ptr.hbm [resolvable:$true] %s18_s11 }
   0x3   :  { %s20_s13 = sshll.u32 %s199_s12, 4  ;;  %s35_s16 = sshll.u32 %s238_s1, 4  ;;  %s21_s13 = int_to_ptr.vmem [resolvable:$true] %s20_s13  ;;  %s36_s16 = int_to_ptr.hbm [resolvable:$true] %s35_s16 }
   0x4   :  { %s200_s17 = smov 128   ;;  %s201_s18 = smov 8  }
   0x5   :  { %26 = dma.hbm_to_vmem [thread:$0]  %s19_s11, 256, %s21_s13, [#allocation3], %s200_s17, %s200_s17, %s201_s18  }
   0x6   :  { %s202_s19 = smov [#allocation5]  }
   0x7   :  { %s37_s20 = sshll.u32 %s202_s19, 4  ;;  %s38_s20 = int_to_ptr.vmem [resolvable:$true] %s37_s20 }
   0x8   :  { %43 = dma.hbm_to_vmem [thread:$0]  %s36_s16, 256, %s38_s20, [#allocation6], %s200_s17, %s200_s17, %s201_s18  }
   0x9   :  { %193 = dma.done.wait [#allocation3], 256  }
   0xa   :  { %194 = vsyncadd [#allocation3], 4294967040 }
   0xb   :  { %195 = dma.done.wait [#allocation6], 256  }
   0xc   :  { %196 = vsyncadd [#allocation6], 4294967040  ;;  %v63_v0 = vld [vmem:[#allocation2] sm:$0xff]  ;;  %v64_v1 = vld [vmem:[#allocation2 + $0x8] sm:$0xff]  ;;  %s203_s0 = smov [#allocation7]   ;;  %s97_s23 = sshll.u32 %s239_s2, 4  ;;  %s98_s23 = int_to_ptr.hbm [resolvable:$true] %s97_s23 }
   0xd   :  { %v65_v2 = vld [vmem:[#allocation5] sm:$0xff]  ;;  %v66_v3 = vld [vmem:[#allocation5 + $0x8] sm:$0xff]  ;;  %v67_v4 = vmul.f32 0.5, %v63_v0  ;;  %v68_v5 = vmul.f32 0.5, %v64_v1  ;;  %s95_s1 = sshll.u32 %s203_s0, 4  ;;  %s96_s1 = int_to_ptr.vmem [resolvable:$true] %s95_s1 }
   0xe   :  { %v88_v6 = vadd.f32 %v66_v3, %v65_v2 }
   0xf   :  { %117 = vtanh.f32 %v67_v4 }
  0x10   :  { %119 = vtanh.f32 %v68_v5  ;;  %90 = vst [vmem:[#allocation7 + $0x10] sm:$0xff] %v88_v6 }
  0x15   :  { %v118_v7 = vpop.eup %117 }
  0x16   :  { %v120_v8 = vpop.eup %119  ;;  %v71_v9 = vadd.f32 1.0, %v118_v7 }
  0x17   :  { %v72_v10 = vadd.f32 1.0, %v120_v8 }
  0x18   :  { %v73_v11 = vmul.f32 0.5, %v71_v9 }
  0x19   :  { %v74_v12 = vmul.f32 0.5, %v72_v10 }
  0x1a   :  { %v76_v13 = vmul.f32 %v73_v11, %v65_v2 }
  0x1b   :  { %v77_v14 = vmul.f32 %v74_v12, %v66_v3  ;;  %v83_v15 = vadd.f32 %v74_v12, %v73_v11 }
  0x1d   :  { %v78_v16 = vadd.f32 %v77_v14, %v76_v13  ;;  %85 = vst [vmem:[#allocation7 + $0x8] sm:$0xff] %v83_v15 }
  0x1f   :  { %80 = vst [vmem:[#allocation7] sm:$0xff] %v78_v16 }
  0x20   :  { %103 = dma.vmem_to_hbm [thread:$0]  %s96_s1, 384, %s98_s23, [#allocation4], %s200_s17, %s200_s17, %s201_s18  }
  0x21   :  { %197 = dma.done.wait [#allocation4], 384  }
  0x22   :  { %198 = vsyncadd [#allocation4], 4294966912 }
  0x23   :  { %108 = vsyncpa [#allocation3], 1 }
  0x24   :  { %109 = vsyncpa [#allocation6], 1 }
  0x25   :  { %110 = vsyncpa [#allocation4], 1 }

</bundles_post_ra>
